<compile_context>
chip_gen: v6e
topology: v6e:2x2x1
jax: 0.10.0
libtpu: 0.0.40
codegen_flags: <defaults>
</compile_context>

<pallas_src>
import functools

import jax
import jax.numpy as jnp
from jax.experimental import pallas as pl
from jax.experimental.pallas import tpu as pltpu


def _round_up(x, m):
    return (x + m - 1) // m * m


def _attention_kernel(seq_ref, w_ref, f_ref, o_ref, m_sc, l_sc, acc_sc, *, tile_t):
    # seq_ref: SMEM (1,) int32  -- true sequence length (scalar prefetch)
    # w_ref:   (1, D)           -- learned query vector
    # f_ref:   (Bb, tile_t, D)  -- one batch-block x T-tile of features (input dtype)
    # o_ref:   (Bb, D)          -- attended feature per batch row
    # scratch: m_sc (Bb,1), l_sc (Bb,1), acc_sc (Bb,D)  f32 online-softmax state
    t = pl.program_id(1)
    seq_len = seq_ref[0]

    @pl.when(t == 0)
    def _init():
        m_sc[...] = jnp.full_like(m_sc, -jnp.inf)
        l_sc[...] = jnp.zeros_like(l_sc)
        acc_sc[...] = jnp.zeros_like(acc_sc)

    f = f_ref[...].astype(jnp.float32)          # (Bb, tt, D)
    w = w_ref[...].astype(jnp.float32)          # (1, D)

    # Zero out rows beyond the real sequence length (the ragged last T-tile may hold
    # stale buffer contents); keeps the weighted-sum matmul NaN-free.
    row3 = t * tile_t + jax.lax.broadcasted_iota(jnp.int32, (1, tile_t, 1), 1)
    f = jnp.where(row3 < seq_len, f, 0.0)

    # Scores: VPU multiply + lane reduce over D -> (Bb, tt).
    s = jnp.sum(f * w[None], axis=-1)
    row2 = t * tile_t + jax.lax.broadcasted_iota(jnp.int32, (1, tile_t), 1)
    s = jnp.where(row2 < seq_len, s, -jnp.inf)

    # Online (flash-style) softmax update.
    m_prev = m_sc[...]                                               # (Bb, 1)
    m_new = jnp.maximum(m_prev, jnp.max(s, axis=-1, keepdims=True))  # (Bb, 1)
    m_safe = jnp.where(m_new == -jnp.inf, 0.0, m_new)                # fully-masked guard
    alpha = jnp.exp(m_prev - m_safe)                                 # (Bb, 1)
    p = jnp.exp(s - m_safe)                                          # (Bb, tt)
    l_sc[...] = alpha * l_sc[...] + jnp.sum(p, axis=-1, keepdims=True)

    # Weighted sum: batched (1,tt)@(tt,D) per batch row on the MXU -> (Bb, D).
    delta = jnp.einsum("bqt,btd->bqd", p[:, None, :], f,
                       preferred_element_type=jnp.float32)[:, 0, :]
    acc_sc[...] = alpha * acc_sc[...] + delta
    m_sc[...] = m_new

    @pl.when(t == pl.num_programs(1) - 1)
    def _finalize():
        l = l_sc[...]
        inv = pl.reciprocal(l, approx=True)     # EUP slot (otherwise idle)
        inv = inv * (2.0 - l * inv)             # one Newton step -> ~exact 1/l
        o_ref[...] = (acc_sc[...] * inv).astype(o_ref.dtype)


@functools.partial(jax.jit, static_argnames=("tile_t", "batch_block"))
def attention_forward_batched(w, states, seq_len=None, *, tile_t=512, batch_block=16):
    """w: (1, D) query; states: (B, T, D) features (f32 or bf16) -> (B, D) f32.

    `seq_len` (optional, runtime scalar) gives the true sequence length when the T
    axis has been padded/bucketed by the caller; trailing rows are masked out.
    """
    B, T, D = states.shape
    assert w.shape == (1, D)

    # --- T tile: full extent if it fits, else a multiple of 8 (the last dim D is
    #     full-extent, so the (8,128) rule only constrains the tt axis). ---
    tile_t = max(8, _round_up(tile_t, 8))
    tt = T if T <= tile_t else tile_t

    # --- batch block: full extent for small B (or when it covers B), else a
    #     multiple of 8 so output stores are >=8 sublanes / unmasked. ---
    if B <= 8 or _round_up(batch_block, 8) >= B:
        Bb = B
    else:
        Bb = _round_up(batch_block, 8)

    # --- keep block footprint within a conservative VMEM budget (v7x: 64 MiB
    #     physical).  est ~ 2x double-buffered input + ~3 f32-sized temporaries. ---
    Dp = _round_up(D, 128)                      # lanes are padded in VMEM (not HBM)
    budget = 40 << 20
    est = 5 * Bb * tt * Dp * 4
    while est > budget and tt > 8:
        tt = max(8, _round_up(tt // 2, 8))
        est = 5 * Bb * tt * Dp * 4
    while est > budget and Bb > 8:
        Bb = max(8, _round_up(Bb // 2, 8))
        est = 5 * Bb * tt * Dp * 4

    n_b = pl.cdiv(B, Bb)
    n_t = pl.cdiv(T, tt)
    vmem_limit = int(min(64 << 20, max(32 << 20, est + (8 << 20))))

    if seq_len is None:
        seq_arr = jnp.full((1,), T, jnp.int32)
    else:
        seq_arr = jnp.asarray(seq_len, jnp.int32).reshape((1,))

    kernel = functools.partial(_attention_kernel, tile_t=tt)

    out = pl.pallas_call(
        kernel,
        out_shape=jax.ShapeDtypeStruct((B, D), jnp.float32),
        grid_spec=pltpu.PrefetchScalarGridSpec(
            num_scalar_prefetch=1,
            grid=(n_b, n_t),
            in_specs=[
                pl.BlockSpec((1, D), lambda b, t, sl: (0, 0)),          # query
                pl.BlockSpec((Bb, tt, D), lambda b, t, sl: (b, t, 0)),  # features
            ],
            out_specs=pl.BlockSpec((Bb, D), lambda b, t, sl: (b, 0)),
            scratch_shapes=[
                pltpu.VMEM((Bb, 1), jnp.float32),   # running max
                pltpu.VMEM((Bb, 1), jnp.float32),   # running denominator
                pltpu.VMEM((Bb, D), jnp.float32),   # running weighted sum
            ],
        ),
        compiler_params=pltpu.CompilerParams(
            dimension_semantics=("parallel", "arbitrary"),
            vmem_limit_bytes=vmem_limit,
        ),
    )(seq_arr, w, states)

    return out


class AttentionPallas:
    """JAX/Pallas mirror of the torch `Attention` module (concrete softmax attention)."""

    OVERRIDE_FORWARD = True   # we concretely override _forward
    arity = 1                 # attends to one place -> one (1, feat_dim) feature
    actor_dependent = False

    def __init__(self, feat_dim, key):
        self.feat_dim = feat_dim
        self.dim = (self.arity or 1) * feat_dim
        # deterministic parameter init (learned query vector)
        self.w = (0.1 * jax.random.normal(key, (1, feat_dim))).astype(jnp.float32)

    def make_out_of_bounds(self):
        # Parameter(torch.Tensor(1, features.dim)).data.zero_()
        return jnp.zeros((1, self.feat_dim), dtype=jnp.float32)

    # TODO(synk): set_actor is abstract in the reference and has no tensor semantics.

    def _forward(self, state):
        # softmax-style attention over this state's (T, D) feature matrix
        feat = attention_forward_batched(self.w, state[None])   # (1, D)
        return (feat,)

    def __call__(self, state):
        # mirrors Attention.forward: run _forward, validate shapes, return tuple
        fts = self._forward(state)
        dim_sum = 0
        if self.arity is None:
            assert len(fts) == 1
        if self.arity is not None:
            assert len(fts) == self.arity
        for ft in fts:
            assert ft.ndim == 2
            assert ft.shape[0] == 1
            dim_sum += ft.shape[1]
        assert dim_sum == self.dim
        return fts


if __name__ == "__main__":
    key = jax.random.PRNGKey(0)
    k_w, k_s, k_s2 = jax.random.split(key, 3)

    # --- small module-shaped test (matches the torch module's forward contract) ---
    B, T, D = 4, 8, 32
    states = jax.random.normal(k_s, (B, T, D), dtype=jnp.float32)
    attn = AttentionPallas(feat_dim=D, key=k_w)

    fts = attn(states[0])                       # single-state module call
    out0 = jax.block_until_ready(fts[0])
    out_b = jax.block_until_ready(attention_forward_batched(attn.w, states))

    scores = jnp.einsum("btd,d->bt", states, attn.w[0])
    ref = jnp.einsum("bt,btd->bd", jax.nn.softmax(scores, axis=-1), states)
    assert out0.shape == (1, D)
    assert out_b.shape == (B, D)
    assert jnp.allclose(out0, ref[0:1], atol=1e-5, rtol=1e-5)
    assert jnp.allclose(out_b, ref, atol=1e-5, rtol=1e-5)

    # --- ragged test: unpadded D, ragged T tail, partial batch block, multi-tile ---
    B2, T2, D2 = 20, 300, 48
    w2 = (0.1 * jax.random.normal(k_w, (1, D2))).astype(jnp.float32)
    states2 = jax.random.normal(k_s2, (B2, T2, D2), dtype=jnp.float32)
    out2 = jax.block_until_ready(
        attention_forward_batched(w2, states2, tile_t=128, batch_block=16))
    sc2 = jnp.einsum("btd,d->bt", states2, w2[0])
    ref2 = jnp.einsum("bt,btd->bd", jax.nn.softmax(sc2, axis=-1), states2)
    assert out2.shape == (B2, D2)
    assert jnp.allclose(out2, ref2, atol=1e-4, rtol=1e-4)

    # --- bf16 features (halves HBM bytes of a purely bandwidth-bound kernel) ---
    states_bf = states2.astype(jnp.bfloat16)
    out_bf = jax.block_until_ready(
        attention_forward_batched(w2, states_bf, tile_t=128, batch_block=16))
    s_bf = states_bf.astype(jnp.float32)
    sc_bf = jnp.einsum("btd,d->bt", s_bf, w2[0])
    ref_bf = jnp.einsum("bt,btd->bd", jax.nn.softmax(sc_bf, axis=-1), s_bf)
    assert jnp.allclose(out_bf, ref_bf, atol=1e-3, rtol=1e-3)

    # --- bucketed-T path: pad T, pass the true seq_len as a runtime scalar ---
    T_pad = 384
    states_pad = jnp.pad(states2, ((0, 0), (0, T_pad - T2), (0, 0)))
    out_pad = jax.block_until_ready(
        attention_forward_batched(w2, states_pad, seq_len=T2,
                                  tile_t=128, batch_block=16))
    assert jnp.allclose(out_pad, ref2, atol=1e-4, rtol=1e-4)

    # out-of-bounds feature (zero parameter) as in make_out_of_bounds
    oob = attn.make_out_of_bounds()
    assert oob.shape == (1, D) and float(jnp.abs(oob).sum()) == 0.0

    print("KERNEL_OK")
</pallas_src>

<mosaic_0001>
module attributes {stable_mosaic.version = 11 : i64} {
  func.func @_attention_kernel(%arg0: i32, %arg1: i32, %arg2: memref<1xi32, #tpu.memory_space<smem>>, %arg3: memref<1x32xf32, #tpu.memory_space<vmem>>, %arg4: memref<1x8x32xf32, #tpu.memory_space<vmem>>, %arg5: memref<1x32xf32, #tpu.memory_space<vmem>>, %arg6: memref<1x1xf32, #tpu.memory_space<vmem>>, %arg7: memref<1x1xf32, #tpu.memory_space<vmem>>, %arg8: memref<1x32xf32, #tpu.memory_space<vmem>>) attributes {dimension_semantics = [#tpu.dimension_semantics<parallel>, #tpu.dimension_semantics<arbitrary>], iteration_bounds = array<i64: 1, 1>, scalar_prefetch = 1 : i64, scratch_operands = 3 : i64, tpu.core_type = #tpu.core_type<tc>, window_params = [{pipeline_mode = #tpu.pipeline_mode<synchronous>, transform_indices = @transform_0, window_bounds = array<i64: 1, 32>}, {transform_indices = @transform_1, window_bounds = array<i64: 1, 8, 32>}, {transform_indices = @transform_2, window_bounds = array<i64: 1, 32>}]} {
    %c0 = arith.constant 0 : index
    %0 = memref.load %arg2[%c0] : memref<1xi32, #tpu.memory_space<smem>>
    %c0_i32 = arith.constant 0 : i32
    %1 = arith.cmpi eq, %arg1, %c0_i32 : i32
    %2 = arith.extui %1 : i1 to i32
    %c0_i32_0 = arith.constant 0 : i32
    %3 = arith.cmpi ne, %2, %c0_i32_0 : i32
    scf.if %3 {
      %cst_28 = arith.constant 0xFF800000 : f32
      %59 = vector.broadcast %cst_28 : f32 to vector<1x1xf32>
      %c0_29 = arith.constant 0 : index
      %c0_30 = arith.constant 0 : index
      %60 = vector.load %arg6[%c0_29, %c0_30] : memref<1x1xf32, #tpu.memory_space<vmem>>, vector<1x1xf32>
      tpu.vector_store %arg6[%c0_29, %c0_30], %59 {strides = array<i32>} : memref<1x1xf32, #tpu.memory_space<vmem>>, vector<1x1xf32>,
      %cst_31 = arith.constant 0.000000e+00 : f32
      %61 = vector.broadcast %cst_31 : f32 to vector<1x1xf32>
      %c0_32 = arith.constant 0 : index
      %c0_33 = arith.constant 0 : index
      %62 = vector.load %arg7[%c0_32, %c0_33] : memref<1x1xf32, #tpu.memory_space<vmem>>, vector<1x1xf32>
      tpu.vector_store %arg7[%c0_32, %c0_33], %61 {strides = array<i32>} : memref<1x1xf32, #tpu.memory_space<vmem>>, vector<1x1xf32>,
      %cst_34 = arith.constant 0.000000e+00 : f32
      %63 = vector.broadcast %cst_34 : f32 to vector<1x32xf32>
      %c0_35 = arith.constant 0 : index
      %c0_36 = arith.constant 0 : index
      %64 = vector.load %arg8[%c0_35, %c0_36] : memref<1x32xf32, #tpu.memory_space<vmem>>, vector<1x32xf32>
      tpu.vector_store %arg8[%c0_35, %c0_36], %63 {strides = array<i32>} : memref<1x32xf32, #tpu.memory_space<vmem>>, vector<1x32xf32>,
    } else {
    }
    %c0_1 = arith.constant 0 : index
    %c0_2 = arith.constant 0 : index
    %c0_3 = arith.constant 0 : index
    %4 = vector.load %arg4[%c0_1, %c0_2, %c0_3] : memref<1x8x32xf32, #tpu.memory_space<vmem>>, vector<1x8x32xf32>
    %c0_4 = arith.constant 0 : index
    %c0_5 = arith.constant 0 : index
    %5 = vector.load %arg3[%c0_4, %c0_5] : memref<1x32xf32, #tpu.memory_space<vmem>>, vector<1x32xf32>
    %c8_i32 = arith.constant 8 : i32
    %6 = arith.muli %arg1, %c8_i32 : i32
    %7 = tpu.iota {dimensions = array<i32: 1>} : vector<1x8x1xi32>
    %8 = vector.broadcast %6 : i32 to vector<1x8x1xi32>
    %9 = arith.addi %8, %7 : vector<1x8x1xi32>
    %10 = vector.broadcast %0 : i32 to vector<1x8x1xi32>
    %11 = arith.cmpi slt, %9, %10 : vector<1x8x1xi32>
    %cst = arith.constant 0.000000e+00 : f32
    %12 = vector.shape_cast %11 : vector<1x8x1xi1> to vector<1x8x1xi1>
    %13 = vector.broadcast %12 : vector<1x8x1xi1> to vector<1x8x32xi1>
    %14 = vector.broadcast %cst : f32 to vector<1x8x32xf32>
    %15 = arith.select %13, %4, %14 : vector<1x8x32xi1>, vector<1x8x32xf32>
    %16 = vector.shape_cast %5 : vector<1x32xf32> to vector<1x1x32xf32>
    %17 = vector.broadcast %16 : vector<1x1x32xf32> to vector<1x8x32xf32>
    %18 = arith.mulf %15, %17 : vector<1x8x32xf32>
    %cst_6 = arith.constant dense<0.000000e+00> : vector<1x8xf32>
    %19 = vector.multi_reduction <add>, %18, %cst_6 [2] : vector<1x8x32xf32> to vector<1x8xf32>
    %c8_i32_7 = arith.constant 8 : i32
    %20 = arith.muli %arg1, %c8_i32_7 : i32
    %21 = tpu.iota {dimensions = array<i32: 1>} : vector<1x8xi32>
    %22 = vector.broadcast %20 : i32 to vector<1x8xi32>
    %23 = arith.addi %22, %21 : vector<1x8xi32>
    %24 = vector.broadcast %0 : i32 to vector<1x8xi32>
    %25 = arith.cmpi slt, %23, %24 : vector<1x8xi32>
    %cst_8 = arith.constant 0xFF800000 : f32
    %26 = vector.broadcast %cst_8 : f32 to vector<1x8xf32>
    %27 = arith.select %25, %19, %26 : vector<1x8xi1>, vector<1x8xf32>
    %c0_9 = arith.constant 0 : index
    %c0_10 = arith.constant 0 : index
    %28 = vector.load %arg6[%c0_9, %c0_10] : memref<1x1xf32, #tpu.memory_space<vmem>>, vector<1x1xf32>
    %cst_11 = arith.constant dense<0xFF800000> : vector<1xf32>
    %29 = vector.multi_reduction <maximumf>, %27, %cst_11 [1] : vector<1x8xf32> to vector<1xf32>
    %30 = vector.shape_cast %29 : vector<1xf32> to vector<1x1xf32>
    %31 = arith.maximumf %28, %30 : vector<1x1xf32>
    %cst_12 = arith.constant 0xFF800000 : f32
    %32 = vector.broadcast %cst_12 : f32 to vector<1x1xf32>
    %33 = arith.cmpf oeq, %31, %32 : vector<1x1xf32>
    %cst_13 = arith.constant 0.000000e+00 : f32
    %34 = vector.broadcast %cst_13 : f32 to vector<1x1xf32>
    %35 = arith.select %33, %34, %31 : vector<1x1xi1>, vector<1x1xf32>
    %36 = arith.subf %28, %35 : vector<1x1xf32>
    %37 = math.exp %36 : vector<1x1xf32>
    %38 = vector.broadcast %35 : vector<1x1xf32> to vector<1x8xf32>
    %39 = arith.subf %27, %38 : vector<1x8xf32>
    %40 = math.exp %39 : vector<1x8xf32>
    %c0_14 = arith.constant 0 : index
    %c0_15 = arith.constant 0 : index
    %41 = vector.load %arg7[%c0_14, %c0_15] : memref<1x1xf32, #tpu.memory_space<vmem>>, vector<1x1xf32>
    %42 = arith.mulf %37, %41 : vector<1x1xf32>
    %cst_16 = arith.constant dense<0.000000e+00> : vector<1xf32>
    %43 = vector.multi_reduction <add>, %40, %cst_16 [1] : vector<1x8xf32> to vector<1xf32>
    %44 = vector.shape_cast %43 : vector<1xf32> to vector<1x1xf32>
    %45 = arith.addf %42, %44 : vector<1x1xf32>
    %c0_17 = arith.constant 0 : index
    %c0_18 = arith.constant 0 : index
    %46 = vector.load %arg7[%c0_17, %c0_18] : memref<1x1xf32, #tpu.memory_space<vmem>>, vector<1x1xf32>
    tpu.vector_store %arg7[%c0_17, %c0_18], %45 {strides = array<i32>} : memref<1x1xf32, #tpu.memory_space<vmem>>, vector<1x1xf32>,
    %47 = vector.shape_cast %40 : vector<1x8xf32> to vector<1x1x8xf32>
    "tpu.trace_start"() <{level = 10 : i32, message = "bqt,btd->bqd"}> : () -> ()
    %cst_19 = arith.constant dense<0.000000e+00> : vector<1x1x32xf32>
    %48 = tpu.matmul %47, %15, %cst_19 {dimension_numbers = #tpu.dot_dimension_numbers<[2], [1], [1], [2], [0, 0, 0, 1, 1, 2], [0], [0]>} : vector<1x1x8xf32>, vector<1x8x32xf32>, vector<1x1x32xf32> -> vector<1x1x32xf32>
    "tpu.trace_stop"() : () -> ()
    %49 = vector.shape_cast %48 : vector<1x1x32xf32> to vector<1x32xf32>
    %c0_20 = arith.constant 0 : index
    %c0_21 = arith.constant 0 : index
    %50 = vector.load %arg8[%c0_20, %c0_21] : memref<1x32xf32, #tpu.memory_space<vmem>>, vector<1x32xf32>
    %51 = vector.broadcast %37 : vector<1x1xf32> to vector<1x32xf32>
    %52 = arith.mulf %51, %50 : vector<1x32xf32>
    %53 = arith.addf %52, %49 : vector<1x32xf32>
    %c0_22 = arith.constant 0 : index
    %c0_23 = arith.constant 0 : index
    %54 = vector.load %arg8[%c0_22, %c0_23] : memref<1x32xf32, #tpu.memory_space<vmem>>, vector<1x32xf32>
    tpu.vector_store %arg8[%c0_22, %c0_23], %53 {strides = array<i32>} : memref<1x32xf32, #tpu.memory_space<vmem>>, vector<1x32xf32>,
    %c0_24 = arith.constant 0 : index
    %c0_25 = arith.constant 0 : index
    %55 = vector.load %arg6[%c0_24, %c0_25] : memref<1x1xf32, #tpu.memory_space<vmem>>, vector<1x1xf32>
    tpu.vector_store %arg6[%c0_24, %c0_25], %31 {strides = array<i32>} : memref<1x1xf32, #tpu.memory_space<vmem>>, vector<1x1xf32>,
    %c0_i32_26 = arith.constant 0 : i32
    %56 = arith.cmpi eq, %arg1, %c0_i32_26 : i32
    %57 = arith.extui %56 : i1 to i32
    %c0_i32_27 = arith.constant 0 : i32
    %58 = arith.cmpi ne, %57, %c0_i32_27 : i32
    scf.if %58 {
      %c0_28 = arith.constant 0 : index
      %c0_29 = arith.constant 0 : index
      %59 = vector.load %arg7[%c0_28, %c0_29] : memref<1x1xf32, #tpu.memory_space<vmem>>, vector<1x1xf32>
      %60 = tpu.reciprocal %59 {approx = true} : vector<1x1xf32> -> vector<1x1xf32>
      %61 = arith.mulf %59, %60 : vector<1x1xf32>
      %cst_30 = arith.constant 2.000000e+00 : f32
      %62 = vector.broadcast %cst_30 : f32 to vector<1x1xf32>
      %63 = arith.subf %62, %61 : vector<1x1xf32>
      %64 = arith.mulf %60, %63 : vector<1x1xf32>
      %c0_31 = arith.constant 0 : index
      %c0_32 = arith.constant 0 : index
      %65 = vector.load %arg8[%c0_31, %c0_32] : memref<1x32xf32, #tpu.memory_space<vmem>>, vector<1x32xf32>
      %66 = vector.broadcast %64 : vector<1x1xf32> to vector<1x32xf32>
      %67 = arith.mulf %65, %66 : vector<1x32xf32>
      %c0_33 = arith.constant 0 : index
      %c0_34 = arith.constant 0 : index
      %68 = vector.load %arg5[%c0_33, %c0_34] : memref<1x32xf32, #tpu.memory_space<vmem>>, vector<1x32xf32>
      tpu.vector_store %arg5[%c0_33, %c0_34], %67 {strides = array<i32>} : memref<1x32xf32, #tpu.memory_space<vmem>>, vector<1x32xf32>,
    } else {
    }
    return
  }
  func.func @transform_0(%arg0: i32, %arg1: i32, %arg2: memref<1xi32, #tpu.memory_space<smem>>) -> (i32, i32) {
    %c0_i32 = arith.constant 0 : i32
    %c0_i32_0 = arith.constant 0 : i32
    %c0_i32_1 = arith.constant 0 : i32
    return %c0_i32, %c0_i32_0 : i32, i32
  }
  func.func @transform_1(%arg0: i32, %arg1: i32, %arg2: memref<1xi32, #tpu.memory_space<smem>>) -> (i32, i32, i32) {
    %c0_i32 = arith.constant 0 : i32
    %c0_i32_0 = arith.constant 0 : i32
    return %arg0, %arg1, %c0_i32 : i32, i32, i32
  }
  func.func @transform_2(%arg0: i32, %arg1: i32, %arg2: memref<1xi32, #tpu.memory_space<smem>>) -> (i32, i32) {
    %c0_i32 = arith.constant 0 : i32
    %c0_i32_0 = arith.constant 0 : i32
    return %arg0, %c0_i32 : i32, i32
  }
}

</mosaic_0001>

<bundles_post_ra>
// kernel: attention_forward_batched.1
= control target key start
LH: loop header
LB: loop body
LE: loop exit
PB: predicated region body
PF: predicated region fallthrough
CT: control target
= control target key end

     0   :  { %9 = vsyncpa [#allocation8], 0  ;;  %s385_s0 = inlined_call_operand.<no memory space> [shape: s32[1], index: 0, kind: input, shape index: {}]   ;;  %s386_s1 = inlined_call_operand.hbm [shape: f32[1,32], index: 1, kind: input, shape index: {}]   ;;  %s387_s2 = inlined_call_operand.hbm [shape: f32[1,8,32], index: 2, kind: input, shape index: {}]   ;;  %s388_s3 = inlined_call_operand.hbm [shape: f32[1,32], index: 3, kind: output, shape index: {}]  }
   0x1   :  { %10 = vsyncpa [#allocation11], 0 }
   0x2   :  { %11 = vsyncpa [#allocation9], 0  ;;  %s329_s12 = smov [#allocation7]   ;;  %s330_s14 = smov [#allocation10]  }
   0x3   :  { %s18_s13 = sshll.u32 %s329_s12, 4  ;;  %s28_s15 = sshll.u32 %s330_s14, 4  ;;  %s19_s13 = int_to_ptr.vmem [resolvable:$true] %s18_s13  ;;  %s29_s15 = int_to_ptr.vmem [resolvable:$true] %s28_s15 }
   0x4   :  { %s271_s16 = scalar_lea.vmem %s19_s13, 16  ;;  %s275_s17 = scalar_lea.vmem %s19_s13, 32 }
   0x5   :  { %p272_p0 = scmp.ne.s32.totalorder %s19_s13, %s271_s16  ;;  %p276_p1 = scmp.lt.s32.totalorder %s19_s13, %s19_s13 }
   0x6   :  { %p277_p2 = scmp.lt.s32.totalorder %s275_s17, %s271_s16 }
   0x8   :  { %p278_p3 = por %p277_p2, %p276_p1 }
   0xa   :  { %p279_p4 = pnand %p278_p3, %p272_p0 }
   0xc   :  { %282 = shalt.err (!%p279_p4)
}
   0xd   :  { %21 = dma.hbm_to_vmem [thread:$0]  %s386_s1, 16, %s19_s13, [#allocation8]  }
   0xe   :  { %s291_s20 = scalar_lea.vmem %s29_s15, 128  ;;  %p296_p6 = scmp.lt.s32.totalorder %s29_s15, %s29_s15 }
   0xf   :  { %p292_p5 = scmp.ne.s32.totalorder %s29_s15, %s291_s20  ;;  %p297_p7 = scmp.lt.s32.totalorder %s291_s20, %s291_s20 }
  0x11   :  { %p298_p8 = por %p297_p7, %p296_p6 }
  0x13   :  { %p299_p9 = pnand %p298_p8, %p292_p5 }
  0x15   :  { %302 = shalt.err (!%p299_p9)
}
  0x16   :  { %31 = dma.hbm_to_vmem [thread:$0]  %s387_s2, 128, %s29_s15, [#allocation11]  }
  0x17   :  { %323 = dma.done.wait [#allocation8], 16  }
  0x18   :  { %324 = vsyncadd [#allocation8], 4294967280 }
  0x19   :  { %325 = dma.done.wait [#allocation11], 128  }
  0x1a   :  { %326 = vsyncadd [#allocation11], 4294967168  ;;  %v51_v0 = vlaneseq  ;;  %v55_v2 = vstv %s385_s0  ;;  %v48_v4 = vld [vmem:[#allocation10] sm:$0xff]  ;;  %v238_v5 = vld [vmem:[#allocation7] ss:$0 sm:$0xff]  ;;  %vm67_vm1 = vcmask 261120  }
  0x1b   :  { %vm43_vm3 = vcmask 0   ;;  %v331_v10 = vmov -inf   ;;  %vm83_vm4 = vcmask 57344   ;;  %v332_v16 = vmov 0   ;;  %s335_s0 = smov [#allocation12]  }
  0x1c   :  { %v52_v1 = vshrl.u32 %v51_v0, 7  ;;  %v72_v9 = vand.u32 127, %v51_v0  ;;  %44 = vst.msk [vmem:[#allocation2] sm:$0x1] %vm43_vm3, %v331_v10  ;;  %255 = vset.pattern.permute.xlu1 %v332_v16  ;;  %256 = vset.pattern.permute.xlu0 %v332_v16  ;;  %v333_v17 = vmov 0.0   ;;  %vm46_vm6 = vcmask 253952  }
  0x1d   :  { %45 = vst.msk [vmem:[#allocation3] sm:$0x1] %vm43_vm3, %v333_v17  ;;  %243 = vmatprep.subr.mxu0 %v333_v17  ;;  %vm334_vm7 = vmmov 0   ;;  %vm113_vm8 = vcmask 64512   ;;  %s228_s1 = sshll.u32 %s335_s0, 4  ;;  %s229_s1 = int_to_ptr.vmem [resolvable:$true] %s228_s1 }
  0x1e   :  { %vm365_vm0 = vcmp.lt.s32.totalorder %v52_v1, %v55_v2  ;;  %vm74_vm2 = vcmp.lt.s32.totalorder %v72_v9, %v55_v2  ;;  %v78_v11 = vsub.s32 %v72_v9, %v52_v1  ;;  %47 = vst.msk [vmem:[#allocation4] sm:$0x1] %vm46_vm6, %v333_v17  ;;  %245 = vmatprep.mubr.msk.f32.mxu0 %vm334_vm7, %v333_v17  ;;  %v100_v25 = vsub.s32 0, %v52_v1  ;;  %s303_s2 = scalar_lea.vmem %s229_s1, 16  ;;  %s307_s25 = scalar_lea.vmem %s229_s1, 32 }
  0x1f   :  { %v59_v6 = vsel %vm365_vm0, %v48_v4, 0.0  ;;  %244 = vmatpush3.msk.msra.mxu0 %vm365_vm0, %v48_v4  ;;  %p304_p10 = scmp.ne.s32.totalorder %s229_s1, %s303_s2  ;;  %p308_p11 = scmp.lt.s32.totalorder %s229_s1, %s229_s1 }
  0x20   :  { %v66_v7 = vmul.f32 %v238_v5, %v59_v6  ;;  %p309_p12 = scmp.lt.s32.totalorder %s307_s25, %s303_s2 }
  0x22   :  { %v68_v8 = vsel %vm67_vm1, %v66_v7, 0.0  ;;  %p310_p13 = por %p309_p12, %p308_p11 }
  0x23   :  { %69 = vadd.xlane.f32.xlu0 %v68_v8  ;;  %v82_v18 = vld [vmem:[#allocation2] sm:$0x1] }
  0x24   :  { %v105_v32 = vld [vmem:[#allocation3] sm:$0x1]  ;;  %p311_p0 = pnand %p310_p13, %p304_p10 }
  0x25   :  { %v187_v43 = vld [vmem:[#allocation4] sm:$0x1] }
  0xac   :  { %v70_v12 = vpop.xlane.xlu0 %69 }
  0xad   :  { %v79_v13 = vrot.slane %v70_v12, %v78_v11 }
  0xaf   :  { %v81_v14 = vsel %vm74_vm2, %v79_v13, -inf }
  0xb0   :  { %v84_v15 = vsel %vm83_vm4, %v81_v14, -inf }
  0xb1   :  { %85 = vmax.xlane.f32.xlu0 %v84_v15 }
 0x13a   :  { %v86_v19 = vpop.xlane.xlu0 %85 }
 0x13b   :  { %v87_v20 = vmax.f32 %v82_v18, %v86_v19 }
 0x13d   :  { %201 = vst.msk [vmem:[#allocation2] sm:$0x1] %vm43_vm3, %v87_v20  ;;  %vm88_vm5 = vcmp.eq.f32.partialorder %v87_v20, -inf }
 0x13e   :  { %v89_v21 = vsel %vm88_vm5, 0.0, %v87_v20 }
 0x13f   :  { %95 = vperm.xlu1 %255, %v89_v21   ;;  %v90_v22 = vsub.f32 %v82_v18, %v89_v21 }
 0x141   :  { %v91_v23 = vmul.f32 1.442695, %v90_v22 }
 0x143   :  { %257 = vpow2.f32 %v91_v23 }
 0x150   :  { %v258_v24 = vpop.eup %257 }
 0x151   :  { %190 = vperm.xlu0 %256, %v258_v24   ;;  %v106_v33 = vmul.f32 %v258_v24, %v105_v32 }
 0x1ba   :  { %v96_v26 = vpop.permute.xlu1 %95 }
 0x1bb   :  { %v101_v27 = vrot.slane %v96_v26, %v100_v25 }
 0x1bd   :  { %v102_v28 = vsub.f32 %v81_v14, %v101_v27 }
 0x1bf   :  { %v103_v29 = vmul.f32 1.442695, %v102_v28 }
 0x1c1   :  { %259 = vpow2.f32 %v103_v29 }
 0x1cc   :  { %v191_v41 = vpop.permute.xlu0 %190 }
 0x1cd   :  { %v196_v42 = vrot.slane %v191_v41, %v100_v25 }
 0x1ce   :  { %v260_v30 = vpop.eup %259 }
 0x1cf   :  { %246 = vmatmul.mubr.msk.f32.vlgmr.msra.gmra.mxu0 %vm113_vm8, %v260_v30  ;;  %v107_v31 = vsel %vm83_vm4, %v260_v30, 0.0  ;;  %v197_v44 = vmul.f32 %v196_v42, %v187_v43 }
 0x1d0   :  { %108 = vadd.xlane.f32.xlu1 %v107_v31 }
 0x259   :  { %v109_v34 = vpop.xlane.xlu1 %108 }
 0x25a   :  { %v110_v35 = vadd.f32 %v109_v34, %v106_v33 }
 0x25c   :  { %112 = vst.msk [vmem:[#allocation3] sm:$0x1] %vm43_vm3, %v110_v35 }
 0x263   :  { %v205_v36 = vld [vmem:[#allocation3] sm:$0x1] }
 0x264   :  { %261 = vrcp.f32 %v205_v36 }
 0x271   :  { %v262_v37 = vpop.eup %261 }
 0x272   :  { %v207_v38 = vmul.f32 %v262_v37, %v205_v36 }
 0x274   :  { %v208_v39 = vsub.f32 2.0, %v207_v38 }
 0x276   :  { %v209_v40 = vmul.f32 %v262_v37, %v208_v39 }
 0x278   :  { %213 = vperm.xlu1 %255, %v209_v40  }
 0x28f   :  { %v183_v45 = vpop.f32.mrf.mxu0 }
 0x290   :  { %v198_v46 = vadd.f32 %v197_v44, %v183_v45 }
 0x291   :  { %v247_v47 = vpop.f32.mrf.mxu0 }
 0x292   :  { %200 = vst.msk [vmem:[#allocation4] sm:$0x1] %vm46_vm6, %v198_v46 }
 0x299   :  { %v210_v50 = vld [vmem:[#allocation4] sm:$0x1] }
 0x2f3   :  { %v214_v48 = vpop.permute.xlu1 %213 }
 0x2f4   :  { %v219_v49 = vrot.slane %v214_v48, %v100_v25 }
 0x2f6   :  { %v220_v51 = vmul.f32 %v219_v49, %v210_v50 }
 0x2f8   :  { %221 = vst.msk [vmem:[#allocation12] sm:$0x1] %vm46_vm6, %v220_v51 }
 0x2f9   :  { %314 = shalt.err (!%p311_p0)
}
 0x2fa   :  { %231 = dma.vmem_to_hbm [thread:$0]  %s229_s1, 16, %s388_s3, [#allocation9]  }
 0x2fb   :  { %327 = dma.done.wait [#allocation9], 16  }
 0x2fc   :  { %328 = vsyncadd [#allocation9], 4294967280 }
 0x2fd   :  { %235 = vsyncpa [#allocation8], 1 }
 0x2fe   :  { %236 = vsyncpa [#allocation11], 1 }
 0x2ff   :  { %237 = vsyncpa [#allocation9], 1 }

</bundles_post_ra>
